<compile_context>
chip_gen: v7x
topology: tpu7x:2x2x1
jax: 0.10.0
libtpu: 0.0.40
codegen_flags: <defaults>
</compile_context>

<pallas_src>
import functools

import jax
import jax.numpy as jnp
from jax.experimental import pallas as pl
from jax.experimental.pallas import tpu as pltpu


def _round_up(x, m):
    return ((x + m - 1) // m) * m


def _lovasz_tile_kernel(derr_ref, fg_ref, carry_ref, gts_ref, tincl_ref,
                        ones_ref, tchunk_ref, posg_ref, out_ref):
    c_pad, k_chunks, lanes = fg_ref.shape          # [C_pad, K, 128]
    tp = k_chunks * lanes

    # ---- hierarchical cumulative sum of the 0/1 foreground indicator (MXU) ----
    # Reshape [C,K,128] -> [C*K,128] is layout preserving (K is a multiple of 8).
    fg2 = fg_ref[...].reshape(c_pad * k_chunks, lanes).astype(jnp.bfloat16)

    # (1) inclusive cumsum inside each 128-lane chunk.
    local = jnp.dot(fg2, tincl_ref[...], preferred_element_type=jnp.float32)
    local = local.reshape(c_pad, k_chunks, lanes)
    # (2) per-chunk totals, already broadcast across lanes (all-ones matrix).
    tot = jnp.dot(fg2, ones_ref[...], preferred_element_type=jnp.float32)
    tot = tot.reshape(c_pad, k_chunks, lanes)
    # (3) exclusive cumsum across chunks (batched matmul, strict lower triangular).
    #     Chunk totals <= 128 are exact in bf16; accumulation is f32.
    chunk_carry = jnp.einsum('ckp,cpj->ckj', tchunk_ref[...],
                             tot.astype(jnp.bfloat16),
                             preferred_element_type=jnp.float32)

    carry_in = carry_ref[0]                        # [C_pad, 1] fg count of previous tiles
    gts = gts_ref[...]                             # [C_pad, 1] global per-class positives
    cum_fg = local + chunk_carry + carry_in[:, :, None]          # global inclusive cumsum

    # ---- jaccard ----
    tile_off = (pl.program_id(0) * tp).astype(jnp.float32)
    pos = posg_ref[...] + tile_off                 # [K, 128], global 1-based position

    gts3 = gts[:, :, None]                         # [C_pad, 1, 1]
    intersection = gts3 - cum_fg
    union = gts3 + (pos[None, :, :] - cum_fg)      # >= 1 everywhere (cum_fg <= gts)
    inv = pl.reciprocal(union, approx=True)        # EUP slot
    inv = inv * (2.0 - union * inv)                # one Newton step -> ~exact f32
    jaccard = 1.0 - intersection * inv

    # ---- telescoped Lovasz dot-product ----
    # loss_c = sum_p jaccard_p * (err_p - err_{p+1}); the weight is streamed in.
    out_ref[...] = jnp.sum(jaccard * derr_ref[...], axis=2, keepdims=True)   # [C_pad,K,1]


@functools.partial(jax.jit, static_argnames=("tile_p",))
def lovasz_softmax(probas, labels, tile_p=8192):
    """probas: [B, C, H, W] (post-softmax); labels: [B, H, W] int. classes='present'."""
    if tile_p % 1024 != 0 or tile_p < 1024:
        raise ValueError("tile_p must be a positive multiple of 1024")
    probas = probas.astype(jnp.float32)
    B, C, H, W = probas.shape
    P = B * H * W

    # Single transpose into the class-major [C, P] layout the kernel consumes.
    probs_t = jnp.transpose(probas, (1, 0, 2, 3)).reshape(C, P)
    labels_flat = labels.reshape(1, P)
    fg = (labels_flat == jnp.arange(C, dtype=labels.dtype)[:, None]).astype(jnp.float32)
    errors = jnp.abs(fg - probs_t)                                   # [C, P]
    gts = jnp.sum(fg, axis=1, keepdims=True)                         # [C, 1] global counts

    # TODO(synk): the data-dependent descending sort has no clean Pallas TPU
    # equivalent; it stays in XLA as a single key/value sort (no argsort+gathers).
    neg_sorted, fg_sorted = jax.lax.sort((-errors, fg), dimension=1, num_keys=1)
    errors_sorted = -neg_sorted
    # Telescoped weights: w_p = err_p - err_{p+1} (err past the end := 0, w >= 0).
    derr = errors_sorted - jnp.concatenate(
        [errors_sorted[:, 1:], jnp.zeros((C, 1), errors_sorted.dtype)], axis=1)

    # ---- tiling / padding (padding has derr = fg = 0 -> contributes nothing) ----
    C_pad = _round_up(max(C, 1), 8)
    # VMEM budget: 2 streams x 2 buffers x 4B + ~8 live f32 temporaries per element.
    budget_tp = max(1024, (((30 << 20) // (48 * C_pad)) // 1024) * 1024)
    TP = min(tile_p, budget_tp, _round_up(P, 1024))
    P_pad = _round_up(P, TP)
    K = TP // 128
    NK = P_pad // 128
    num_tiles = P_pad // TP

    derr_p = jnp.pad(derr, ((0, C_pad - C), (0, P_pad - P)))
    fg_p = jnp.pad(fg_sorted, ((0, C_pad - C), (0, P_pad - P)))
    gts_p = jnp.pad(gts, ((0, C_pad - C), (0, 0)))

    # Per-tile exclusive cum(fg) carries -> the grid can run fully parallel.
    tile_sums = fg_p.reshape(C_pad, num_tiles, TP).sum(axis=2)       # [C_pad, T]
    carry_excl = jnp.cumsum(tile_sums, axis=1) - tile_sums           # exclusive
    carries = jnp.transpose(carry_excl, (1, 0)).reshape(num_tiles, C_pad, 1)

    # Chunked 3D layout: lanes = 128-pixel chunks, sublanes = chunk index.
    derr3 = derr_p.reshape(C_pad, NK, 128)
    fg3 = fg_p.reshape(C_pad, NK, 128)

    # Resident constants.
    lane = jnp.arange(128)
    tri_incl = (lane[:, None] <= lane[None, :]).astype(jnp.bfloat16)   # [128,128]
    ones128 = jnp.ones((128, 128), jnp.bfloat16)
    ck = jnp.arange(K)
    tri_chunk = jnp.broadcast_to(
        (ck[:, None] > ck[None, :]).astype(jnp.bfloat16)[None], (C_pad, K, K))
    posg = (ck[:, None] * 128 + lane[None, :] + 1).astype(jnp.float32)  # [K,128]

    # Explicit VMEM limit: streams (double-buffered) + residents + f32 temporaries.
    stream_b = 2 * 2 * C_pad * TP * 4
    temp_b = 8 * C_pad * TP * 4
    resident_b = 2 * (2 * 128 * 128 * 2 + C_pad * K * K * 2 + K * 128 * 4
                      + C_pad * 4 * 2 + C_pad * K * 4)
    vmem_limit = int(1.3 * (stream_b + temp_b + resident_b)) + (2 << 20)
    vmem_limit = min(max(vmem_limit, 24 << 20), 48 << 20)

    partials = pl.pallas_call(
        _lovasz_tile_kernel,
        out_shape=jax.ShapeDtypeStruct((C_pad, NK, 1), jnp.float32),
        grid_spec=pltpu.PrefetchScalarGridSpec(
            num_scalar_prefetch=0,
            grid=(num_tiles,),
            in_specs=[
                pl.BlockSpec((C_pad, K, 128), lambda i: (0, i, 0)),   # dErr tiles
                pl.BlockSpec((C_pad, K, 128), lambda i: (0, i, 0)),   # fg tiles
                pl.BlockSpec((1, C_pad, 1), lambda i: (i, 0, 0)),     # per-tile carry
                pl.BlockSpec((C_pad, 1), lambda i: (0, 0)),           # global gts
                pl.BlockSpec((128, 128), lambda i: (0, 0)),           # tri (incl)
                pl.BlockSpec((128, 128), lambda i: (0, 0)),           # ones
                pl.BlockSpec((C_pad, K, K), lambda i: (0, 0, 0)),     # tri (chunks)
                pl.BlockSpec((K, 128), lambda i: (0, 0)),             # local positions
            ],
            out_specs=pl.BlockSpec((C_pad, K, 1), lambda i: (0, i, 0)),
        ),
        compiler_params=pltpu.CompilerParams(
            dimension_semantics=("parallel",),      # no loop-carried state anymore
            vmem_limit_bytes=vmem_limit,
        ),
    )(derr3, fg3, carries, gts_p, tri_incl, ones128, tri_chunk, posg)

    # Present-class mean ('present' classes = gts > 0), done once in the wrapper.
    per_class = jnp.sum(partials.reshape(C_pad, NK), axis=1)
    present = (gts_p[:, 0] > 0).astype(jnp.float32)
    n_present = jnp.sum(present)
    return jnp.where(n_present > 0,
                     jnp.sum(per_class * present) / jnp.maximum(n_present, 1.0),
                     0.0)


def lovasz_softmax_ref(probas, labels):
    """Pure-JAX reference mirroring the PyTorch module (ignore=None, classes='present')."""
    B, C, H, W = probas.shape
    pf = jnp.transpose(probas, (0, 2, 3, 1)).reshape(-1, C)
    lf = labels.reshape(-1)
    losses, present = [], []
    for c in range(C):
        fg = (lf == c).astype(jnp.float32)
        errs = jnp.abs(fg - pf[:, c])
        order = jnp.argsort(-errs)
        es = errs[order]
        fs = fg[order]
        gts = fs.sum()
        inter = gts - jnp.cumsum(fs)
        union = gts + jnp.cumsum(1.0 - fs)
        jac = 1.0 - inter / union
        jac = jnp.concatenate([jac[:1], jac[1:] - jac[:-1]])
        losses.append(jnp.dot(es, jac))
        present.append((gts > 0).astype(jnp.float32))
    losses = jnp.stack(losses)
    present = jnp.stack(present)
    return jnp.sum(losses * present) / jnp.maximum(jnp.sum(present), 1.0)


if __name__ == "__main__":
    key = jax.random.PRNGKey(0)
    k1, k2 = jax.random.split(key)
    B, C, H, W = 2, 4, 24, 24                       # P = 1152 pixels

    logits = jax.random.normal(k1, (B, C, H, W), dtype=jnp.float32)
    probas = jax.nn.softmax(logits, axis=1)         # [B, C, H, W]
    labels = jax.random.randint(k2, (B, H, W), 0, C, dtype=jnp.int32)

    # tile_p=1024 -> P_pad = 2048 -> 2 parallel tiles: exercises the precomputed
    # cross-tile carries, the chunk-level MXU scan, and in-tile zero padding.
    loss = jax.block_until_ready(lovasz_softmax(probas, labels, tile_p=1024))
    ref = jax.block_until_ready(lovasz_softmax_ref(probas, labels))

    assert jnp.isfinite(loss), "kernel produced non-finite loss"
    assert jnp.allclose(loss, ref, rtol=5e-5, atol=5e-5), (loss, ref)
    print("KERNEL_OK")
</pallas_src>

<mosaic_0001>
module attributes {stable_mosaic.version = 11 : i64} {
  func.func @_lovasz_tile_kernel(%arg0: i32, %arg1: memref<8x8x128xf32, #tpu.memory_space<vmem>>, %arg2: memref<8x8x128xf32, #tpu.memory_space<vmem>>, %arg3: memref<1x8x1xf32, #tpu.memory_space<vmem>>, %arg4: memref<8x1xf32, #tpu.memory_space<vmem>>, %arg5: memref<128x128xbf16, #tpu.memory_space<vmem>>, %arg6: memref<128x128xbf16, #tpu.memory_space<vmem>>, %arg7: memref<8x8x8xbf16, #tpu.memory_space<vmem>>, %arg8: memref<8x128xf32, #tpu.memory_space<vmem>>, %arg9: memref<8x8x1xf32, #tpu.memory_space<vmem>>) attributes {dimension_semantics = [#tpu.dimension_semantics<parallel>], iteration_bounds = array<i64: 2>, scalar_prefetch = 0 : i64, scratch_operands = 0 : i64, tpu.core_type = #tpu.core_type<tc>, window_params = [{transform_indices = @transform_0, window_bounds = array<i64: 8, 8, 128>}, {transform_indices = @transform_1, window_bounds = array<i64: 8, 8, 128>}, {transform_indices = @transform_2, window_bounds = array<i64: 1, 8, 1>}, {pipeline_mode = #tpu.pipeline_mode<synchronous>, transform_indices = @transform_3, window_bounds = array<i64: 8, 1>}, {pipeline_mode = #tpu.pipeline_mode<synchronous>, transform_indices = @transform_4, window_bounds = array<i64: 128, 128>}, {pipeline_mode = #tpu.pipeline_mode<synchronous>, transform_indices = @transform_5, window_bounds = array<i64: 128, 128>}, {pipeline_mode = #tpu.pipeline_mode<synchronous>, transform_indices = @transform_6, window_bounds = array<i64: 8, 8, 8>}, {pipeline_mode = #tpu.pipeline_mode<synchronous>, transform_indices = @transform_7, window_bounds = array<i64: 8, 128>}, {transform_indices = @transform_8, window_bounds = array<i64: 8, 8, 1>}]} {
    %c0 = arith.constant 0 : index
    %c0_0 = arith.constant 0 : index
    %c0_1 = arith.constant 0 : index
    %0 = vector.load %arg2[%c0, %c0_0, %c0_1] : memref<8x8x128xf32, #tpu.memory_space<vmem>>, vector<8x8x128xf32>
    %1 = vector.shape_cast %0 : vector<8x8x128xf32> to vector<64x128xf32>
    %2 = arith.truncf %1 : vector<64x128xf32> to vector<64x128xbf16>
    %c0_2 = arith.constant 0 : index
    %c0_3 = arith.constant 0 : index
    %3 = vector.load %arg5[%c0_2, %c0_3] : memref<128x128xbf16, #tpu.memory_space<vmem>>, vector<128x128xbf16>
    %cst = arith.constant dense<0.000000e+00> : vector<64x128xf32>
    %4 = tpu.matmul %2, %3, %cst {dimension_numbers = #tpu.dot_dimension_numbers<[1], [0], [0], [1], [0, 0, 1, 1], [], []>} : vector<64x128xbf16>, vector<128x128xbf16>, vector<64x128xf32> -> vector<64x128xf32>
    %5 = vector.shape_cast %4 : vector<64x128xf32> to vector<8x8x128xf32>
    %c0_4 = arith.constant 0 : index
    %c0_5 = arith.constant 0 : index
    %6 = vector.load %arg6[%c0_4, %c0_5] : memref<128x128xbf16, #tpu.memory_space<vmem>>, vector<128x128xbf16>
    %cst_6 = arith.constant dense<0.000000e+00> : vector<64x128xf32>
    %7 = tpu.matmul %2, %6, %cst_6 {dimension_numbers = #tpu.dot_dimension_numbers<[1], [0], [0], [1], [0, 0, 1, 1], [], []>} : vector<64x128xbf16>, vector<128x128xbf16>, vector<64x128xf32> -> vector<64x128xf32>
    %8 = vector.shape_cast %7 : vector<64x128xf32> to vector<8x8x128xf32>
    %c0_7 = arith.constant 0 : index
    %c0_8 = arith.constant 0 : index
    %c0_9 = arith.constant 0 : index
    %9 = vector.load %arg7[%c0_7, %c0_8, %c0_9] : memref<8x8x8xbf16, #tpu.memory_space<vmem>>, vector<8x8x8xbf16>
    %10 = arith.truncf %8 : vector<8x8x128xf32> to vector<8x8x128xbf16>
    "tpu.trace_start"() <{level = 10 : i32, message = "ckp,cpj->ckj"}> : () -> ()
    %cst_10 = arith.constant dense<0.000000e+00> : vector<8x8x128xf32>
    %11 = tpu.matmul %9, %10, %cst_10 {dimension_numbers = #tpu.dot_dimension_numbers<[2], [1], [1], [2], [0, 0, 0, 1, 1, 2], [0], [0]>} : vector<8x8x8xbf16>, vector<8x8x128xbf16>, vector<8x8x128xf32> -> vector<8x8x128xf32>
    "tpu.trace_stop"() : () -> ()
    %c0_11 = arith.constant 0 : index
    %c0_12 = arith.constant 0 : index
    %c0_13 = arith.constant 0 : index
    %12 = vector.load %arg3[%c0_11, %c0_12, %c0_13] : memref<1x8x1xf32, #tpu.memory_space<vmem>>, vector<1x8x1xf32>
    %13 = vector.shape_cast %12 : vector<1x8x1xf32> to vector<8x1xf32>
    %c0_14 = arith.constant 0 : index
    %c0_15 = arith.constant 0 : index
    %14 = vector.load %arg4[%c0_14, %c0_15] : memref<8x1xf32, #tpu.memory_space<vmem>>, vector<8x1xf32>
    %15 = arith.addf %5, %11 : vector<8x8x128xf32>
    %16 = vector.shape_cast %13 : vector<8x1xf32> to vector<8x1x1xf32>
    %17 = vector.broadcast %16 : vector<8x1x1xf32> to vector<8x8x128xf32>
    %18 = arith.addf %15, %17 : vector<8x8x128xf32>
    %c1024_i32 = arith.constant 1024 : i32
    %19 = arith.muli %arg0, %c1024_i32 : i32
    %20 = arith.sitofp %19 : i32 to f32
    %c0_16 = arith.constant 0 : index
    %c0_17 = arith.constant 0 : index
    %21 = vector.load %arg8[%c0_16, %c0_17] : memref<8x128xf32, #tpu.memory_space<vmem>>, vector<8x128xf32>
    %22 = vector.broadcast %20 : f32 to vector<8x128xf32>
    %23 = arith.addf %21, %22 : vector<8x128xf32>
    %24 = vector.shape_cast %14 : vector<8x1xf32> to vector<8x1x1xf32>
    %25 = vector.broadcast %24 : vector<8x1x1xf32> to vector<8x8x128xf32>
    %26 = arith.subf %25, %18 : vector<8x8x128xf32>
    %27 = vector.shape_cast %23 : vector<8x128xf32> to vector<1x8x128xf32>
    %28 = vector.broadcast %27 : vector<1x8x128xf32> to vector<8x8x128xf32>
    %29 = arith.subf %28, %18 : vector<8x8x128xf32>
    %30 = vector.broadcast %24 : vector<8x1x1xf32> to vector<8x8x128xf32>
    %31 = arith.addf %30, %29 : vector<8x8x128xf32>
    %32 = tpu.reciprocal %31 {approx = true} : vector<8x8x128xf32> -> vector<8x8x128xf32>
    %33 = arith.mulf %31, %32 : vector<8x8x128xf32>
    %cst_18 = arith.constant 2.000000e+00 : f32
    %34 = vector.broadcast %cst_18 : f32 to vector<8x8x128xf32>
    %35 = arith.subf %34, %33 : vector<8x8x128xf32>
    %36 = arith.mulf %32, %35 : vector<8x8x128xf32>
    %37 = arith.mulf %26, %36 : vector<8x8x128xf32>
    %cst_19 = arith.constant 1.000000e+00 : f32
    %38 = vector.broadcast %cst_19 : f32 to vector<8x8x128xf32>
    %39 = arith.subf %38, %37 : vector<8x8x128xf32>
    %c0_20 = arith.constant 0 : index
    %c0_21 = arith.constant 0 : index
    %c0_22 = arith.constant 0 : index
    %40 = vector.load %arg1[%c0_20, %c0_21, %c0_22] : memref<8x8x128xf32, #tpu.memory_space<vmem>>, vector<8x8x128xf32>
    %41 = arith.mulf %39, %40 : vector<8x8x128xf32>
    %cst_23 = arith.constant dense<0.000000e+00> : vector<8x8xf32>
    %42 = vector.multi_reduction <add>, %41, %cst_23 [2] : vector<8x8x128xf32> to vector<8x8xf32>
    %43 = vector.shape_cast %42 : vector<8x8xf32> to vector<8x8x1xf32>
    %c0_24 = arith.constant 0 : index
    %c0_25 = arith.constant 0 : index
    %c0_26 = arith.constant 0 : index
    %44 = vector.load %arg9[%c0_24, %c0_25, %c0_26] : memref<8x8x1xf32, #tpu.memory_space<vmem>>, vector<8x8x1xf32>
    tpu.vector_store %arg9[%c0_24, %c0_25, %c0_26], %43 {strides = array<i32>} : memref<8x8x1xf32, #tpu.memory_space<vmem>>, vector<8x8x1xf32>,
    return
  }
  func.func @transform_0(%arg0: i32) -> (i32, i32, i32) {
    %c0_i32 = arith.constant 0 : i32
    %c0_i32_0 = arith.constant 0 : i32
    %c0_i32_1 = arith.constant 0 : i32
    return %c0_i32, %arg0, %c0_i32_0 : i32, i32, i32
  }
  func.func @transform_1(%arg0: i32) -> (i32, i32, i32) {
    %c0_i32 = arith.constant 0 : i32
    %c0_i32_0 = arith.constant 0 : i32
    %c0_i32_1 = arith.constant 0 : i32
    return %c0_i32, %arg0, %c0_i32_0 : i32, i32, i32
  }
  func.func @transform_2(%arg0: i32) -> (i32, i32, i32) {
    %c0_i32 = arith.constant 0 : i32
    %c0_i32_0 = arith.constant 0 : i32
    %c0_i32_1 = arith.constant 0 : i32
    return %arg0, %c0_i32, %c0_i32_0 : i32, i32, i32
  }
  func.func @transform_3(%arg0: i32) -> (i32, i32) {
    %c0_i32 = arith.constant 0 : i32
    %c0_i32_0 = arith.constant 0 : i32
    %c0_i32_1 = arith.constant 0 : i32
    return %c0_i32, %c0_i32_0 : i32, i32
  }
  func.func @transform_4(%arg0: i32) -> (i32, i32) {
    %c0_i32 = arith.constant 0 : i32
    %c0_i32_0 = arith.constant 0 : i32
    %c0_i32_1 = arith.constant 0 : i32
    return %c0_i32, %c0_i32_0 : i32, i32
  }
  func.func @transform_5(%arg0: i32) -> (i32, i32) {
    %c0_i32 = arith.constant 0 : i32
    %c0_i32_0 = arith.constant 0 : i32
    %c0_i32_1 = arith.constant 0 : i32
    return %c0_i32, %c0_i32_0 : i32, i32
  }
  func.func @transform_6(%arg0: i32) -> (i32, i32, i32) {
    %c0_i32 = arith.constant 0 : i32
    %c0_i32_0 = arith.constant 0 : i32
    %c0_i32_1 = arith.constant 0 : i32
    %c0_i32_2 = arith.constant 0 : i32
    return %c0_i32, %c0_i32_0, %c0_i32_1 : i32, i32, i32
  }
  func.func @transform_7(%arg0: i32) -> (i32, i32) {
    %c0_i32 = arith.constant 0 : i32
    %c0_i32_0 = arith.constant 0 : i32
    %c0_i32_1 = arith.constant 0 : i32
    return %c0_i32, %c0_i32_0 : i32, i32
  }
  func.func @transform_8(%arg0: i32) -> (i32, i32, i32) {
    %c0_i32 = arith.constant 0 : i32
    %c0_i32_0 = arith.constant 0 : i32
    %c0_i32_1 = arith.constant 0 : i32
    return %c0_i32, %arg0, %c0_i32_0 : i32, i32, i32
  }
}

</mosaic_0001>

<bundles_post_ra>
// kernel: eq.12
= control target key start
LH: loop header
LB: loop body
LE: loop exit
PB: predicated region body
PF: predicated region fallthrough
CT: control target
= control target key end

     0   :  { %2 = vsyncpa [#allocation1], 0  ;;  %s272_s6 = smov [#allocation0]   ;;  %s386_s0 = inlined_call_operand.hbm [shape: s32[2,24,24], index: 0, kind: input, shape index: {}]   ;;  %s387_s1 = inlined_call_operand.vmem [shape: s32[1152], index: 1, kind: output, shape index: {}]  }
   0x1   :  { %s7_s7 = sshll.u32 %s272_s6, 4  ;;  %s248_s10 = scalar_lea.hbm %s386_s0, 768  ;;  %s8_s7 = int_to_ptr.vmem [resolvable:$true] %s7_s7 }
   0x2   :  { %p249_p0 = scmp.ne.s32.totalorder %s386_s0, %s248_s10  ;;  %p252_p1 = scmp.lt.u32.totalorder %s248_s10, %s386_s0 }
   0x4   :  { %p254_p2 = pnand %p252_p1, %p249_p0 }
   0x6   :  { %257 = shalt.err (!%p254_p2)
}
   0x7   :  { %s258_s15 = scalar_lea.vmem %s8_s7, 768  ;;  %p263_p4 = scmp.lt.s32.totalorder %s8_s7, %s8_s7 }
   0x8   :  { %p259_p3 = scmp.ne.s32.totalorder %s8_s7, %s258_s15  ;;  %p264_p5 = scmp.lt.s32.totalorder %s258_s15, %s258_s15 }
   0xa   :  { %p265_p6 = por %p264_p5, %p263_p4 }
   0xc   :  { %p266_p7 = pnand %p265_p6, %p259_p3 }
   0xe   :  { %269 = shalt.err (!%p266_p7)
}
   0xf   :  { %10 = dma.hbm_to_vmem [thread:$0]  %s386_s0, 768, %s8_s7, [#allocation1]  }
  0x10   :  { %270 = dma.done.wait [#allocation1], 768  }
  0x11   :  { %271 = vsyncadd [#allocation1], 4294966528  ;;  %s91_s0 = smov 3  ;;  %s68_s18 = smov 3  ;;  %vm16_vm0 = vcmask 1042434   ;;  %vm34_vm1 = vcmask 64512  }
  0x12   :  { %s21_s19 = smov 3  ;;  %s28_s20 = smov 3  ;;  %v92_v0 = vld [vmem:[#allocation0 + $0x9] ss:$16 sm:%s91_s0]   ;;  %v69_v2 = vld [vmem:[#allocation0 + $0xf] ss:$16 sm:%s68_s18]  }
  0x13   :  { %s80_s21 = smov 3  ;;  %s44_s22 = smov 3  ;;  %v94_v1 = vld [vmem:[#allocation0 + $0x27] sm:$0x4]   ;;  %v71_v4 = vld [vmem:[#allocation0 + $0x2d] sm:$0x4]  }
  0x14   :  { %s51_s23 = smov 3  ;;  %s103_s24 = smov 3  ;;  %v96_v3 = vsel %vm16_vm0, %v94_v1, %v92_v0  ;;  %v22_v5 = vld [vmem:[#allocation0 + $0x5] ss:$16 sm:%s21_s19]   ;;  %v73_v7 = vsel %vm16_vm0, %v71_v4, %v69_v2  ;;  %v81_v11 = vld [vmem:[#allocation0 + $0x4] ss:$16 sm:%s80_s21]  }
  0x15   :  { %v24_v6 = vld [vmem:[#allocation0 + $0x23] sm:$0x4]   ;;  %s273_s25 = smov 88   ;;  %s274_s26 = smov 104   ;;  %v83_v13 = vld [vmem:[#allocation0 + $0x22] sm:$0x4]  }
  0x16   :  { %97 = vrot.lane.b32.xlu0 %v96_v3, %s273_s25  ;;  %v26_v8 = vsel %vm16_vm0, %v24_v6, %v22_v5  ;;  %v29_v9 = vld [vmem:[#allocation0 + $0x5] ss:$16 sm:%s28_s20]   ;;  %74 = vrot.lane.b32.xlu1 %v73_v7, %s274_s26  ;;  %v45_v14 = vld [vmem:[#allocation0 + $0xa] ss:$16 sm:%s44_s22]   ;;  %v85_v17 = vsel %vm16_vm0, %v83_v13, %v81_v11  ;;  %vm38_vm2 = vcmask 130048   ;;  %s115_s27 = smov 3 }
  0x17   :  { %v31_v10 = vld [vmem:[#allocation0 + $0x23] sm:$0x4]   ;;  %v47_v15 = vld [vmem:[#allocation0 + $0x28] sm:$0x4]   ;;  %v104_v22 = vld [vmem:[#allocation0 + $0xe] ss:$16 sm:%s103_s24]  }
  0x18   :  { %v33_v12 = vsel %vm16_vm0, %v31_v10, %v29_v9  ;;  %v49_v18 = vsel %vm16_vm0, %v47_v15, %v45_v14  ;;  %v52_v19 = vld [vmem:[#allocation0 + $0xa] ss:$16 sm:%s51_s23]   ;;  %v106_v23 = vld [vmem:[#allocation0 + $0x2c] sm:$0x4]   ;;  %s275_s28 = smov 120   ;;  %s126_s29 = smov 3 }
  0x19   :  { %v35_v16 = vsel %vm34_vm1, %v33_v12, %v26_v8  ;;  %v54_v20 = vld [vmem:[#allocation0 + $0x28] sm:$0x4]   ;;  %s276_s30 = smov 96   ;;  %v108_v25 = vsel %vm16_vm0, %v106_v23, %v104_v22  ;;  %v116_v26 = vld [vmem:[#allocation0 + $0x3] ss:$16 sm:%s115_s27]   ;;  %s138_s2 = smov 3 }
  0x1a   :  { %v56_v21 = vsel %vm16_vm0, %v54_v20, %v52_v19  ;;  %36 = vrot.lane.b32.xlu0 %v35_v16, %s275_s28  ;;  %86 = vrot.lane.b32.xlu1 %v85_v17, %s276_s30  ;;  %v118_v27 = vld [vmem:[#allocation0 + $0x21] sm:$0x4]   ;;  %v127_v28 = vld [vmem:[#allocation0 + $0x8] ss:$16 sm:%s126_s29]   ;;  %s277_s3 = smov 112   ;;  %s150_s4 = smov 3 }
  0x1b   :  { %v58_v24 = vsel %vm38_vm2, %v56_v21, %v49_v18  ;;  %v129_v29 = vld [vmem:[#allocation0 + $0x26] sm:$0x4]   ;;  %s278_s5 = smov 80   ;;  %v120_v30 = vsel %vm16_vm0, %v118_v27, %v116_v26  ;;  %v139_v32 = vld [vmem:[#allocation0 + $0xd] ss:$16 sm:%s138_s2]   ;;  %s161_s6 = smov 3 }
  0x1c   :  { %v131_v31 = vsel %vm16_vm0, %v129_v29, %v127_v28  ;;  %v141_v33 = vld [vmem:[#allocation0 + $0x2b] sm:$0x4]   ;;  %v151_v34 = vld [vmem:[#allocation0 + $0x2] ss:$16 sm:%s150_s4]   ;;  %s279_s7 = smov 72   ;;  %s173_s8 = smov 3 }
  0x1d   :  { %v153_v35 = vld [vmem:[#allocation0 + $0x20] sm:$0x4]   ;;  %s12_s9 = smov 3  ;;  %vm18_vm3 = vcmask 195584   ;;  %v15_v36 = vld [vmem:[#allocation0 + $0x1e] sm:$0x4]   ;;  %v143_v37 = vsel %vm16_vm0, %v141_v33, %v139_v32 }
  0x1e   :  { %59 = vrot.lane.b32.xlu0 %v58_v24, %s277_s3  ;;  %109 = vrot.lane.b32.xlu1 %v108_v25, %s278_s5  ;;  %s280_s10 = smov 64   ;;  %v13_v38 = vld [vmem:[#allocation0] ss:$16 sm:%s12_s9]   ;;  %v155_v39 = vsel %vm16_vm0, %v153_v35, %v151_v34  ;;  %v162_v40 = vld [vmem:[#allocation0 + $0x7] ss:$16 sm:%s161_s6]   ;;  %s185_s11 = smov 3 }
  0x1f   :  { %v164_v41 = vld [vmem:[#allocation0 + $0x25] sm:$0x4]   ;;  %v17_v42 = vsel %vm16_vm0, %v15_v36, %v13_v38  ;;  %v174_v43 = vld [vmem:[#allocation0 + $0xc] ss:$16 sm:%s173_s8]   ;;  %s281_s14 = smov 56   ;;  %s196_s15 = smov 3 }
  0x20   :  { %v176_v44 = vld [vmem:[#allocation0 + $0x2a] sm:$0x4]   ;;  %19 = vst.msk [vmem:[%s387_s1] ss:$3 sm:$0x7] %vm18_vm3, %v17_v42   ;;  %s282_s16 = smov 48   ;;  %v166_v45 = vsel %vm16_vm0, %v164_v41, %v162_v40 }
  0x21   :  { %v178_v46 = vsel %vm16_vm0, %v176_v44, %v174_v43  ;;  %v186_v47 = vld [vmem:[#allocation0 + $0x1] ss:$16 sm:%s185_s11]   ;;  %v197_v49 = vld [vmem:[#allocation0 + $0x6] ss:$16 sm:%s196_s15]   ;;  %s208_s17 = smov 3  ;;  %s283_s0 = smov 40  }
  0x22   :  { %121 = vrot.lane.b32.xlu0 %v120_v30, %s279_s7  ;;  %132 = vrot.lane.b32.xlu1 %v131_v31, %s280_s10  ;;  %v188_v48 = vld [vmem:[#allocation0 + $0x1f] sm:$0x4]   ;;  %v199_v50 = vld [vmem:[#allocation0 + $0x24] sm:$0x4]   ;;  %s284_s18 = smov 32   ;;  %s285_s19 = smov 24  }
  0x23   :  { %v190_v51 = vsel %vm16_vm0, %v188_v48, %v186_v47  ;;  %v201_v52 = vsel %vm16_vm0, %v199_v50, %v197_v49  ;;  %v209_v53 = vld [vmem:[#allocation0 + $0xb] ss:$16 sm:%s208_s17]   ;;  %s286_s20 = smov 16   ;;  %s287_s21 = smov 8   ;;  %vm41_vm4 = vcmask 1048512   ;;  %vm88_vm5 = vcmask 982784  }
  0x24   :  { %v211_v54 = vld [vmem:[#allocation0 + $0x29] sm:$0x4]   ;;  %vm64_vm6 = vcmask 1048448   ;;  %vm99_vm7 = vcmask 917184   ;;  %vm76_vm8 = vcmask 1048384   ;;  %vm111_vm9 = vcmask 851584  }
  0x25   :  { %v213_v55 = vsel %vm16_vm0, %v211_v54, %v209_v53  ;;  %vm123_vm10 = vcmask 785984   ;;  %vm134_vm11 = vcmask 720384   ;;  %vm146_vm12 = vcmask 654784  }
  0x26   :  { %144 = vrot.lane.b32.xlu0 %v143_v37, %s281_s14  ;;  %156 = vrot.lane.b32.xlu1 %v155_v39, %s282_s16  ;;  %vm158_vm13 = vcmask 589184   ;;  %vm169_vm14 = vcmask 523584   ;;  %vm181_vm15 = vcmask 457984   ;;  %vm193_vm0 = vcmask 392384  }
  0x2a   :  { %167 = vrot.lane.b32.xlu0 %v166_v45, %s283_s0  ;;  %179 = vrot.lane.b32.xlu1 %v178_v46, %s284_s18 }
  0x2e   :  { %191 = vrot.lane.b32.xlu0 %v190_v51, %s285_s19  ;;  %202 = vrot.lane.b32.xlu1 %v201_v52, %s286_s20 }
  0x32   :  { %214 = vrot.lane.b32.xlu0 %v213_v55, %s287_s21 }
  0x88   :  { %v98_v56 = vpop.permute.xlu0 %97   ;;  %v75_v57 = vpop.permute.xlu1 %74  }
  0x8c   :  { %v37_v58 = vpop.permute.xlu0 %36   ;;  %v87_v59 = vpop.permute.xlu1 %86  }
  0x8d   :  { %220 = vst.msk [vmem:[%s387_s1 + $0x1] ss:$3 sm:$0x7] %vm38_vm2, %v37_v58   ;;  %vm216_vm2 = vcmask 261184  }
  0x8e   :  { %42 = vst.msk [vmem:[%s387_s1] ss:$3 sm:$0x7] %vm41_vm4, %v37_v58  }
  0x8f   :  { %89 = vst.msk [vmem:[%s387_s1] ss:$3 sm:$0x7] %vm88_vm5, %v87_v59  }
  0x90   :  { %v60_v60 = vpop.permute.xlu0 %59   ;;  %v110_v61 = vpop.permute.xlu1 %109  }
  0x91   :  { %221 = vst.msk [vmem:[%s387_s1 + $0x2] ss:$3 sm:$0x7] %vm34_vm1, %v60_v60   ;;  %vm204_vm1 = vcmask 326784  }
  0x92   :  { %222 = vst.msk [vmem:[%s387_s1 + $0x1] ss:$3 sm:$0x7] %vm64_vm6, %v60_v60  }
  0x93   :  { %223 = vst.msk [vmem:[%s387_s1 + $0x2] ss:$3 sm:$0x7] %vm76_vm8, %v75_v57  }
  0x94   :  { %224 = vst.msk [vmem:[%s387_s1 + $0x1] ss:$3 sm:$0x7] %vm99_vm7, %v98_v56   ;;  %v122_v62 = vpop.permute.xlu0 %121   ;;  %v133_v63 = vpop.permute.xlu1 %132  }
  0x95   :  { %225 = vst.msk [vmem:[%s387_s1 + $0x2] ss:$3 sm:$0x7] %vm111_vm9, %v110_v61  }
  0x96   :  { %124 = vst.msk [vmem:[%s387_s1] ss:$3 sm:$0x7] %vm123_vm10, %v122_v62  }
  0x97   :  { %226 = vst.msk [vmem:[%s387_s1 + $0x1] ss:$3 sm:$0x7] %vm134_vm11, %v133_v63  }
  0x98   :  { %v145_v0 = vpop.permute.xlu0 %144   ;;  %v157_v1 = vpop.permute.xlu1 %156  }
  0x99   :  { %227 = vst.msk [vmem:[%s387_s1 + $0x2] ss:$3 sm:$0x7] %vm146_vm12, %v145_v0  }
  0x9a   :  { %159 = vst.msk [vmem:[%s387_s1] ss:$3 sm:$0x7] %vm158_vm13, %v157_v1  }
  0x9c   :  { %v168_v2 = vpop.permute.xlu0 %167   ;;  %v180_v3 = vpop.permute.xlu1 %179  }
  0x9d   :  { %228 = vst.msk [vmem:[%s387_s1 + $0x1] ss:$3 sm:$0x7] %vm169_vm14, %v168_v2  }
  0x9e   :  { %229 = vst.msk [vmem:[%s387_s1 + $0x2] ss:$3 sm:$0x7] %vm181_vm15, %v180_v3  }
  0xa0   :  { %v192_v4 = vpop.permute.xlu0 %191   ;;  %v203_v5 = vpop.permute.xlu1 %202  }
  0xa1   :  { %194 = vst.msk [vmem:[%s387_s1] ss:$3 sm:$0x7] %vm193_vm0, %v192_v4  }
  0xa2   :  { %230 = vst.msk [vmem:[%s387_s1 + $0x1] ss:$3 sm:$0x7] %vm204_vm1, %v203_v5  }
  0xa4   :  { %v215_v6 = vpop.permute.xlu0 %214  }
  0xa5   :  { %231 = vst.msk [vmem:[%s387_s1 + $0x2] ss:$3 sm:$0x7] %vm216_vm2, %v215_v6  }
  0xa6   :  { %219 = vsyncpa [#allocation1], 1 }

// kernel: neg.3
= control target key start
LH: loop header
LB: loop body
LE: loop exit
PB: predicated region body
PF: predicated region fallthrough
CT: control target
= control target key end

     0   :  { %s152_s0 = inlined_call_operand.vmem [shape: f32[4,1152], index: 0, kind: input, shape index: {}]   ;;  %s153_s1 = inlined_call_operand.vmem [shape: f32[4,1152], index: 1, kind: output, shape index: {}]  }
   0x1   :  { %v2_v0 = vld [vmem:[%s152_s0] sm:$0xf]  ;;  %v72_v1 = vld [vmem:[%s152_s0 + $0x4] sm:$0xf]  ;;  %v74_v2 = vld [vmem:[%s152_s0 + $0x8] sm:$0xf] }
   0x2   :  { %v5_v3 = vxor.u32 2147483648, %v2_v0  ;;  %v12_v4 = vxor.u32 2147483648, %v72_v1  ;;  %v20_v5 = vxor.u32 2147483648, %v74_v2  ;;  %v76_v6 = vld [vmem:[%s152_s0 + $0xc] sm:$0xf] }
   0x3   :  { %v28_v7 = vxor.u32 2147483648, %v76_v6  ;;  %v78_v8 = vld [vmem:[%s152_s0 + $0x10] sm:$0xf]  ;;  %v80_v9 = vld [vmem:[%s152_s0 + $0x14] sm:$0xf] }
   0x4   :  { %7 = vst [vmem:[%s153_s1] sm:$0xf] %v5_v3  ;;  %73 = vst [vmem:[%s153_s1 + $0x4] sm:$0xf] %v12_v4  ;;  %v36_v10 = vxor.u32 2147483648, %v78_v8  ;;  %v44_v11 = vxor.u32 2147483648, %v80_v9 }
   0x5   :  { %75 = vst [vmem:[%s153_s1 + $0x8] sm:$0xf] %v20_v5  ;;  %v82_v12 = vld [vmem:[%s152_s0 + $0x18] sm:$0xf]  ;;  %v84_v13 = vld [vmem:[%s152_s0 + $0x1c] sm:$0xf] }
   0x6   :  { %77 = vst [vmem:[%s153_s1 + $0xc] sm:$0xf] %v28_v7  ;;  %v52_v14 = vxor.u32 2147483648, %v82_v12  ;;  %v60_v15 = vxor.u32 2147483648, %v84_v13  ;;  %v86_v16 = vld [vmem:[%s152_s0 + $0x20] sm:$0xf] }
   0x7   :  { %79 = vst [vmem:[%s153_s1 + $0x10] sm:$0xf] %v36_v10  ;;  %81 = vst [vmem:[%s153_s1 + $0x14] sm:$0xf] %v44_v11  ;;  %v68_v17 = vxor.u32 2147483648, %v86_v16 }
   0x8   :  { %83 = vst [vmem:[%s153_s1 + $0x18] sm:$0xf] %v52_v14  ;;  %85 = vst [vmem:[%s153_s1 + $0x1c] sm:$0xf] %v60_v15 }
   0x9   :  { %87 = vst [vmem:[%s153_s1 + $0x20] sm:$0xf] %v68_v17 }

// kernel: lovasz_softmax.1
= control target key start
LH: loop header
LB: loop body
LE: loop exit
PB: predicated region body
PF: predicated region fallthrough
CT: control target
= control target key end

     0   :  { %s1952_s27 = smov 0   ;;  %s1954_s28 = smov 0   ;;  %s2287_s0 = inlined_call_operand.vmem [shape: f32[8,16,128], index: 0, kind: input, shape index: {}]   ;;  %s2288_s1 = inlined_call_operand.vmem [shape: f32[8,16,128], index: 1, kind: input, shape index: {}]   ;;  %s2289_s2 = inlined_call_operand.vmem [shape: f32[2,8,1], index: 2, kind: input, shape index: {}]   ;;  %s2290_s3 = inlined_call_operand.vmem [shape: f32[8,1], index: 3, kind: input, shape index: {}]   ;;  %s2291_s4 = inlined_call_operand.vmem [shape: bf16[128,128], index: 4, kind: input, shape index: {}]   ;;  %s2292_s5 = inlined_call_operand.vmem [shape: bf16[128,128], index: 5, kind: input, shape index: {}]   ;;  %s2293_s6 = inlined_call_operand.vmem [shape: bf16[8,8,8], index: 6, kind: input, shape index: {}]   ;;  %s2294_s7 = inlined_call_operand.vmem [shape: f32[8,128], index: 7, kind: input, shape index: {}]   ;;  %s2295_s8 = inlined_call_operand.vmem [shape: f32[8,16,1], index: 8, kind: output, shape index: {}]  }
   0x1   :  { %s1956_s29 = smov 0  }
   0x2 LB: > { %s1968_s30 = sadd.s32 4294967295, %s1901_s29   ;;  %s1971_s9 = sadd.s32 1, %s1901_s29   ;;  %s1901_s29 = sphi %s1956_s29, %s2300_s29   ;;  %s1897_s28 = sphi %s1954_s28, %s2299_s28   ;;  %s1893_s27 = sphi %s1952_s27, %s2298_s27  }
   0x3   : > { %s22_s10 = ssub.s32 %s1901_s29, %s1971_s9  ;;  %s25_s11 = sadd.s32 1, %s1897_s28 }
   0x4   : > { %p23_p0 = scmp.eq.s32.totalorder %s22_s10, 0  ;;  %p32_p1 = scmp.ne.s32.totalorder %s1897_s28, %s1893_s27 }
   0x5   : > { %p33_p2 = scmp.eq.s32.totalorder %s1901_s29, 0  ;;  %p219_p3 = scmp.eq.s32.totalorder %s1968_s30, 1 }
   0x6   : > { %s1981_s12 = scalar_select %p23_p0, %s1897_s28, %s25_s11  }
   0x7   : > { %p1983_p4 = por %p33_p2, %p32_p1  ;;  %p1987_p5 = por %p219_p3, %p32_p1 }
   0x8   : > { %p1640_p6 = scmp.ge.s32.totalorder %s1901_s29, 2 }
   0xa   : > { %256 = sbr.rel (%p1640_p6) target bundleno = 33 (0x21), region = 36 }
  0x11   : > { %259 = sbr.rel (!%p1983_p4) target bundleno = 25 (0x19), region = 40  ;;  %s261_s15 = sand.u32 (%p1983_p4), 1, %s1897_s28  }
  0x12   : > { %s1642_s16 = sshll.u32 (%p1983_p4), %s1901_s29, 3  ;;  %s1641_s17 = sshll.u32 (%p1983_p4), %s261_s15, 6 }
  0x13   : > { %s265_s20 = scalar_lea.vmem (%p1983_p4), %s2287_s0, %s1642_s16  ;;  %s263_s21 = scalar_lea.vmem (%p1983_p4), [#allocation2], %s1641_s17 }
  0x14   : > { %v307_v0 = vld [vmem:[%s265_s20] sm:$0xff] (%p1983_p4)  ;;  %v309_v1 = vld [vmem:[%s265_s20 + $0x10] sm:$0xff] (%p1983_p4) }
  0x15   : > { %v311_v2 = vld [vmem:[%s265_s20 + $0x20] sm:$0xff] (%p1983_p4)  ;;  %308 = vst [vmem:[%s263_s21] sm:$0xff] (%p1983_p4), %v307_v0  ;;  %310 = vst [vmem:[%s263_s21 + $0x8] sm:$0xff] (%p1983_p4), %v309_v1  ;;  %v313_v3 = vld [vmem:[%s265_s20 + $0x30] sm:$0xff] (%p1983_p4) }
  0x16   : > { %312 = vst [vmem:[%s263_s21 + $0x10] sm:$0xff] (%p1983_p4), %v311_v2  ;;  %v315_v4 = vld [vmem:[%s265_s20 + $0x40] sm:$0xff] (%p1983_p4)  ;;  %v317_v5 = vld [vmem:[%s265_s20 + $0x50] sm:$0xff] (%p1983_p4)  ;;  %314 = vst [vmem:[%s263_s21 + $0x18] sm:$0xff] (%p1983_p4), %v313_v3 }
  0x17   : > { %316 = vst [vmem:[%s263_s21 + $0x20] sm:$0xff] (%p1983_p4), %v315_v4  ;;  %318 = vst [vmem:[%s263_s21 + $0x28] sm:$0xff] (%p1983_p4), %v317_v5  ;;  %v319_v6 = vld [vmem:[%s265_s20 + $0x60] sm:$0xff] (%p1983_p4)  ;;  %v321_v7 = vld [vmem:[%s265_s20 + $0x70] sm:$0xff] (%p1983_p4) }
  0x18   : > { %320 = vst [vmem:[%s263_s21 + $0x30] sm:$0xff] %v319_v6  ;;  %322 = vst [vmem:[%s263_s21 + $0x38] sm:$0xff] %v321_v7 }
  0x19 PF: > { %328 = sbr.rel (!%p1983_p4) target bundleno = 33 (0x21), region = 78  ;;  %s330_s22 = sand.u32 (%p1983_p4), 1, %s1897_s28  }
  0x1a   : > { %s1644_s23 = sshll.u32 (%p1983_p4), %s1901_s29, 3  ;;  %s1643_s24 = sshll.u32 (%p1983_p4), %s330_s22, 6 }
  0x1b   : > { %s334_s10 = scalar_lea.vmem (%p1983_p4), %s2288_s1, %s1644_s23  ;;  %s332_s11 = scalar_lea.vmem (%p1983_p4), [#allocation3], %s1643_s24 }
  0x1c   : > { %v376_v8 = vld [vmem:[%s334_s10] sm:$0xff] (%p1983_p4)  ;;  %v378_v9 = vld [vmem:[%s334_s10 + $0x10] sm:$0xff] (%p1983_p4) }
  0x1d   : > { %v380_v10 = vld [vmem:[%s334_s10 + $0x20] sm:$0xff] (%p1983_p4)  ;;  %377 = vst [vmem:[%s332_s11] sm:$0xff] (%p1983_p4), %v376_v8  ;;  %379 = vst [vmem:[%s332_s11 + $0x8] sm:$0xff] (%p1983_p4), %v378_v9  ;;  %v382_v11 = vld [vmem:[%s334_s10 + $0x30] sm:$0xff] (%p1983_p4) }
  0x1e   : > { %381 = vst [vmem:[%s332_s11 + $0x10] sm:$0xff] (%p1983_p4), %v380_v10  ;;  %v384_v12 = vld [vmem:[%s334_s10 + $0x40] sm:$0xff] (%p1983_p4)  ;;  %v386_v13 = vld [vmem:[%s334_s10 + $0x50] sm:$0xff] (%p1983_p4)  ;;  %383 = vst [vmem:[%s332_s11 + $0x18] sm:$0xff] (%p1983_p4), %v382_v11 }
  0x1f   : > { %385 = vst [vmem:[%s332_s11 + $0x20] sm:$0xff] (%p1983_p4), %v384_v12  ;;  %387 = vst [vmem:[%s332_s11 + $0x28] sm:$0xff] (%p1983_p4), %v386_v13  ;;  %v388_v14 = vld [vmem:[%s334_s10 + $0x60] sm:$0xff] (%p1983_p4)  ;;  %v390_v15 = vld [vmem:[%s334_s10 + $0x70] sm:$0xff] (%p1983_p4) }
  0x20   : > { %389 = vst [vmem:[%s332_s11 + $0x30] sm:$0xff] %v388_v14  ;;  %391 = vst [vmem:[%s332_s11 + $0x38] sm:$0xff] %v390_v15 }
  0x21 PF: > { %p1645_p7 = scmp.ge.s32.totalorder %s1901_s29, 1  ;;  %p403_p8 = scmp.lt.s32.totalorder %s1901_s29, 3 }
  0x23   : > { %p404_p9 = pnand %p1645_p7, %p403_p8 }
  0x24   : > { %v1845_v16 = vld [vmem:[%s2292_s5] sm:$0xff] (!%p404_p9)   ;;  %s410_s16 = sand.u32 (!%p404_p9), 1, %s1893_s27   ;;  %v1846_v17 = vld [vmem:[%s2292_s5 + $0x8] sm:$0xff] (!%p404_p9)   ;;  %v1847_v18 = vld [vmem:[%s2292_s5 + $0x10] sm:$0xff] (!%p404_p9)   ;;  %v1903_v44 = vmov (!%p404_p9), 0.0   ;;  %vm1904_vm0 = vmmov (!%p404_p9), 0   ;;  %v1133_v45 = vlaneseq (!%p404_p9) }
  0x25   : > { %407 = sbr.rel (%p404_p9) target bundleno = 708 (0x2c4), region = 120  ;;  %1743 = vmatprep.subr.bf16.mxu1 (!%p404_p9), %v1845_v16  ;;  %s2015_s19 = sshll.u32 (!%p404_p9), %s410_s16, 6  ;;  %v1848_v19 = vld [vmem:[%s2292_s5 + $0x18] sm:$0xff] (!%p404_p9)   ;;  %v1849_v23 = vld [vmem:[%s2292_s5 + $0x20] sm:$0xff] (!%p404_p9)   ;;  %v1854_v25 = vld [vmem:[%s2291_s4 + $0x8] sm:$0xff] (!%p404_p9)   ;;  %v1905_v46 = vmov (!%p404_p9), 0  }
  0x26   : > { %1744 = vmatpush3.bf16.msra.mxu1 (!%p404_p9), %v1845_v16  ;;  %s2024_s27 = scalar_lea.vmem (!%p404_p9), [#allocation3], %s2015_s19  ;;  %v1853_v24 = vld [vmem:[%s2291_s4] sm:$0xff] (!%p404_p9)   ;;  %v1855_v26 = vld [vmem:[%s2291_s4 + $0x10] sm:$0xff] (!%p404_p9)   ;;  %v1850_v27 = vld [vmem:[%s2292_s5 + $0x28] sm:$0xff] (!%p404_p9)   ;;  %p457_p10 = scmp.lt.s32.totalorder (!%p404_p9), %s1968_s30, 1  ;;  %1843 = vset.pattern.permute.xlu0 (!%p404_p9), %v1905_v46  ;;  %v1134_v49 = vshrl.u32 (!%p404_p9), %v1133_v45, 7 }
  0x27   : > { %1745 = vmatprep.subr.bf16.mxu1 (!%p404_p9), %v1846_v17  ;;  %v462_v20 = vld [vmem:[%s2024_s27] sm:$0xff] (!%p404_p9)  ;;  %v463_v21 = vld [vmem:[%s2024_s27 + $0x8] sm:$0xff] (!%p404_p9)  ;;  %1719 = vmatprep.subr.bf16.mxu0 (!%p404_p9), %v1853_v24  ;;  %v1856_v28 = vld [vmem:[%s2291_s4 + $0x18] sm:$0xff] (!%p404_p9)   ;;  %v1906_v47 = vmov (!%p404_p9), 1966171168   ;;  %vm752_vm1 = vcmask (!%p404_p9), 1043456  }
  0x28   : > { %v470_v22 = vpack.c.bf16 (!%p404_p9), %v463_v21, %v462_v20  ;;  %1720 = vmatpush3.bf16.msra.mxu0 (!%p404_p9), %v1853_v24  ;;  %v1851_v29 = vld [vmem:[%s2292_s5 + $0x30] sm:$0xff] (!%p404_p9)   ;;  %v1857_v30 = vld [vmem:[%s2291_s4 + $0x20] sm:$0xff] (!%p404_p9)   ;;  %v1852_v31 = vld [vmem:[%s2292_s5 + $0x38] sm:$0xff] (!%p404_p9)   ;;  %v1131_v48 = vunpack.c.l.s4 (!%p404_p9), %v1906_v47  ;;  %1844 = vset.pattern.permute.xlu1 (!%p404_p9), %v1905_v46  ;;  %v1180_v55 = vsub.s32 (!%p404_p9), 0, %v1134_v49  ;;  %vm748_vm2 = vcmask (!%p404_p9), 64512   ;;  %s1674_s23 = sshll.u32 (!%p404_p9), %s1968_s30, 10 }
  0x29   : > { %1721 = vmatprep.subr.bf16.mxu0 (!%p404_p9), %v1854_v25  ;;  %v464_v32 = vld [vmem:[%s2024_s27 + $0x10] sm:$0xff] (!%p404_p9)  ;;  %v465_v33 = vld [vmem:[%s2024_s27 + $0x18] sm:$0xff] (!%p404_p9)  ;;  %v1858_v34 = vld [vmem:[%s2291_s4 + $0x28] sm:$0xff] (!%p404_p9)   ;;  %s1251_s24 = scvt.s32.f32 (!%p404_p9), %s1674_s23  ;;  %s2217_s10 = scalar_lea.vmem (!%p404_p9), [#allocation2], %s2015_s19  ;;  %vm1473_vm3 = vcmask (!%p404_p9), 7168  }
  0x2a   : > { %1746 = vmatpush3.bf16.msra.mxu1 (!%p404_p9), %v1846_v17  ;;  %1759 = vmatprep.mubr.bf16.mxu1 (!%p404_p9), %v470_v22  ;;  %v466_v35 = vld [vmem:[%s2024_s27 + $0x20] sm:$0xff] (!%p404_p9)  ;;  %v467_v36 = vld [vmem:[%s2024_s27 + $0x28] sm:$0xff] (!%p404_p9)  ;;  %v471_v37 = vpack.c.bf16 (!%p404_p9), %v465_v33, %v464_v32  ;;  %v1859_v39 = vld [vmem:[%s2291_s4 + $0x30] sm:$0xff] (!%p404_p9)   ;;  %v1132_v50 = vunpack.c.0.s8 (!%p404_p9), %v1131_v48  ;;  %s2245_s11 = scalar_lea.vmem (!%p404_p9), [#allocation4], %s2015_s19 }
  0x2b   : > { %1747 = vmatprep.subr.bf16.mxu1 (!%p404_p9), %v1847_v18  ;;  %1735 = vmatprep.mubr.bf16.mxu0 (!%p404_p9), %v470_v22  ;;  %v472_v38 = vpack.c.bf16 (!%p404_p9), %v467_v36, %v466_v35  ;;  %v468_v40 = vld [vmem:[%s2024_s27 + $0x30] sm:$0xff] (!%p404_p9)  ;;  %v469_v41 = vld [vmem:[%s2024_s27 + $0x38] sm:$0xff] (!%p404_p9)  ;;  %v1119_v51 = vld [vmem:[%s2290_s3] sm:$0xff] (!%p404_p9) }
  0x2c   : > { %1722 = vmatpush3.bf16.msra.mxu0 %v1854_v25  ;;  %v1860_v42 = vld [vmem:[%s2291_s4 + $0x38] sm:$0xff]   ;;  %v473_v43 = vpack.c.bf16 %v469_v41, %v468_v40  ;;  %s458_s27 = scalar_select %p457_p10, %s1968_s30, 1  ;;  %v1135_v52 = vsub.s32 %v1132_v50, %v1134_v49  ;;  %v1256_v14 = vcombine.high %v1119_v51, %v1119_v51  ;;  %v732_v41 = vld [vmem:[%s2293_s6] sm:$0xf]  ;;  %v733_v45 = vld [vmem:[%s2293_s6 + $0x4] sm:$0xf] }
  0x2d   : > { %1723 = vmatprep.subr.bf16.mxu0 %v1855_v26  ;;  %s1676_s19 = sshll.u32 (%p1987_p5), %s1968_s30, 3 }
  0x2e   : > { %1748 = vmatpush3.bf16.msra.mxu1 %v1847_v18  ;;  %s1649_s17 = sshll.u32 %s458_s27, 3  ;;  %v1263_v56 = vrot.slane %v1119_v51, %v1135_v52  ;;  %s1490_s16 = scalar_lea.vmem (%p1987_p5), %s2295_s8, %s1676_s19 }
  0x2f   : > { %1749 = vmatprep.subr.bf16.mxu1 %v1848_v19  ;;  %s460_s22 = scalar_lea.vmem %s2289_s2, %s1649_s17 }
  0x30   : > { %1724 = vmatpush3.bf16.msra.mxu0 %v1855_v26  ;;  %v1118_v53 = vld [vmem:[%s460_s22] sm:$0xff]  ;;  %v1279_v60 = vrot.slane %v1263_v56, %v1135_v52  ;;  %v1271_v61 = vcombine.high %v1263_v56, %v1263_v56  ;;  %v734_v56 = vld [vmem:[%s2293_s6 + $0x8] sm:$0xf] }
  0x31   : > { %1725 = vmatprep.subr.bf16.mxu0 %v1856_v28  ;;  %v1136_v54 = vrot.slane %v1118_v53, %v1135_v52  ;;  %v1129_v57 = vcombine.high %v1118_v53, %v1118_v53 }
  0x32   : > { %1750 = vmatpush3.bf16.msra.mxu1 %v1848_v19  ;;  %v1293_v0 = vrot.slane %v1271_v61, %v1135_v52  ;;  %v1308_v1 = vrot.slane %v1279_v60, %v1180_v55  ;;  %v1301_v18 = vcombine.high %v1279_v60, %v1279_v60  ;;  %v1270_v19 = vrot.slane %v1256_v14, %v1135_v52  ;;  %v735_v60 = vld [vmem:[%s2293_s6 + $0xc] sm:$0xf] }
  0x33   : > { %1751 = vmatprep.subr.bf16.mxu1 %v1849_v23  ;;  %v1152_v58 = vrot.slane %v1136_v54, %v1135_v52  ;;  %v1144_v59 = vcombine.high %v1136_v54, %v1136_v54  ;;  %v1143_v4 = vrot.slane %v1129_v57, %v1135_v52 }
  0x34   : > { %1726 = vmatpush3.bf16.msra.mxu0 %v1856_v28  ;;  %v1312_v5 = vrot.slane %v1293_v0, %v1180_v55  ;;  %v1303_v21 = vcombine.high %v1293_v0, %v1293_v0  ;;  %v1272_v22 = vcombine.high %v1270_v19, %v1270_v19  ;;  %v1286_v24 = vrot.slane %v1270_v19, %v1135_v52 }
  0x35   : > { %1727 = vmatprep.subr.bf16.mxu0 %v1857_v30  ;;  %v1181_v62 = vrot.slane %v1152_v58, %v1180_v55  ;;  %v1174_v63 = vcombine.high %v1152_v58, %v1152_v58  ;;  %v1166_v3 = vrot.slane %v1144_v59, %v1135_v52  ;;  %v1145_v7 = vcombine.high %v1143_v4, %v1143_v4 }
  0x36   : > { %1752 = vmatpush3.bf16.msra.mxu1 %v1849_v23  ;;  %v1159_v9 = vrot.slane %v1143_v4, %v1135_v52  ;;  %v1316_v23 = vrot.slane %v1301_v18, %v1180_v55  ;;  %v1320_v25 = vrot.slane %v1303_v21, %v1180_v55  ;;  %v1300_v26 = vrot.slane %v1272_v22, %v1135_v52 }
  0x37   : > { %1753 = vmatprep.subr.bf16.mxu1 %v1850_v27  ;;  %1211 = vperm.xlu0 %1843, %v1181_v62   ;;  %v1189_v2 = vrot.slane %v1174_v63, %v1180_v55  ;;  %v1176_v6 = vcombine.high %v1166_v3, %v1166_v3  ;;  %v1185_v8 = vrot.slane %v1166_v3, %v1180_v55 }
  0x38   : > { %1728 = vmatpush3.bf16.msra.mxu0 %v1857_v30  ;;  %v1173_v11 = vrot.slane %v1145_v7, %v1135_v52  ;;  %v1197_v12 = vrot.slane %v1159_v9, %v1180_v55  ;;  %v1175_v13 = vcombine.high %v1159_v9, %v1159_v9  ;;  %v1302_v28 = vcombine.high %v1286_v24, %v1286_v24  ;;  %v739_v9 = vld [vmem:[%s2293_s6 + $0x1c] sm:$0xf] }
  0x39   : > { %1729 = vmatprep.subr.bf16.mxu0 %v1858_v34  ;;  %1219 = vperm.xlu1 %1844, %v1189_v2   ;;  %v1193_v10 = vrot.slane %v1176_v6, %v1180_v55  ;;  %v1304_v30 = vcombine.high %v1300_v26, %v1300_v26 }
  0x3a   : > { %1754 = vmatpush3.bf16.msra.mxu1 %v1850_v27  ;;  %v1201_v15 = vrot.slane %v1173_v11, %v1180_v55  ;;  %v1177_v16 = vcombine.high %v1173_v11, %v1173_v11  ;;  %v1205_v17 = vrot.slane %v1175_v13, %v1180_v55  ;;  %v1324_v27 = vrot.slane %v1286_v24, %v1180_v55 }
  0x3b   : > { %1755 = vmatprep.subr.bf16.mxu1 %v1851_v29  ;;  %1338 = vperm.xlu0 %1843, %v1308_v1   ;;  %v1336_v32 = vrot.slane %v1304_v30, %v1180_v55  ;;  %v736_v1 = vld [vmem:[%s2293_s6 + $0x10] sm:$0xf] }
  0x3c   : > { %1730 = vmatpush3.bf16.msra.mxu0 %v1858_v34  ;;  %v1209_v20 = vrot.slane %v1177_v16, %v1180_v55  ;;  %v1253_v16 = vstv %s1251_s24 }
  0x3d   : > { %1731 = vmatprep.subr.bf16.mxu0 %v1859_v39  ;;  %1342 = vperm.xlu1 %1844, %v1312_v5   ;;  %v737_v5 = vld [vmem:[%s2293_s6 + $0x14] sm:$0xf] }
  0x3e   : > { %1756 = vmatpush3.bf16.msra.mxu1 %v1851_v29  ;;  %v1328_v29 = vrot.slane %v1300_v26, %v1180_v55 }
  0x3f   : > { %1757 = vmatprep.subr.bf16.mxu1 %v1852_v31  ;;  %1215 = vperm.xlu0 %1843, %v1185_v8   ;;  %v738_v8 = vld [vmem:[%s2293_s6 + $0x18] sm:$0xf] }
  0x40   : > { %1732 = vmatpush3.bf16.msra.mxu0 %v1859_v39 }
  0x41   : > { %1733 = vmatprep.subr.bf16.mxu0 %v1860_v42  ;;  %1223 = vperm.xlu1 %1844, %v1193_v10  }
  0x42   : > { %1758 = vmatpush3.bf16.msra.mxu1 %v1852_v31  ;;  %v1332_v31 = vrot.slane %v1302_v28, %v1180_v55 }
  0x43   : > { %1773 = vmatprep.subr.bf16.mxu1 %v1903_v44  ;;  %1227 = vperm.xlu0 %1843, %v1197_v12  }
  0x44   : > { %1734 = vmatpush3.bf16.msra.mxu0 %v1860_v42 }
  0x45   : > { %1760 = vmatmul.mubr.bf16.vlgmr.msra.gmra.mrb[0].mxu1 %v471_v37  ;;  %1767 = vmatprep.subr.bf16.mxu0 %v1903_v44 }
  0x46   : > { %1763 = vmatprep.mubr.bf16.mxu1 %v472_v38  ;;  %1231 = vperm.xlu1 %1844, %v1201_v15   ;;  %v1252_v15 = vld [vmem:[%s2294_s7] sm:$0xff] }
  0x47   : > { %1736 = vmatmul.mubr.bf16.vlgmr.msra.gmra.mrb[0].mxu0 %v471_v37  ;;  %1235 = vperm.xlu0 %1843, %v1205_v17  }
  0x48   : > { %1739 = vmatprep.mubr.bf16.mxu0 %v472_v38 }
  0x4a   : > { %1239 = vperm.xlu1 %1844, %v1209_v20   ;;  %v2162_v20 = vadd.f32 %v1253_v16, %v1252_v15 }
  0x4b   : > { %1346 = vperm.xlu0 %1843, %v1316_v23  }
  0x4d   : > { %1764 = vmatmul.mubr.bf16.gmra.mrb[4].mxu1 %v473_v43 }
  0x4e   : > { %1775 = vmatprep.mubr.msk.bf16.mxu1 %vm1904_vm0, %v1903_v44  ;;  %1350 = vperm.xlu1 %1844, %v1320_v25  }
  0x4f   : > { %1740 = vmatmul.mubr.bf16.gmra.mrb[4].mxu0 %v473_v43  ;;  %1354 = vperm.xlu0 %1843, %v1324_v27  }
  0x50   : > { %1769 = vmatprep.mubr.msk.bf16.mxu0 %vm1904_vm0, %v1903_v44 }
  0x52   : > { %1358 = vperm.xlu1 %1844, %v1328_v29  }
  0x53   : > { %1362 = vperm.xlu0 %1843, %v1332_v31  }
  0x56   : > { %1366 = vperm.xlu1 %1844, %v1336_v32  }
  0xb6   : > { %v1212_v10 = vpop.permute.xlu0 %1211 }
  0xb8   : > { %v1220_v11 = vpop.permute.xlu1 %1219 }
  0xba   : > { %v2154_v12 = vpop.permute.xlu0 %1338 }
  0xbc   : > { %v2156_v13 = vpop.permute.xlu1 %1342 }
  0xc0   : > { %v1224_v14 = vpop.permute.xlu1 %1223 }
  0xc5   : > { %v1232_v21 = vpop.permute.xlu1 %1231 }
 0x118   : > { %v1761_v33 = vpop.f32.mrb[0].mxu1 }
 0x119   : > { %v701_v34 = vpop.f32.mrb[1].mxu1  ;;  %v742_v38 = vpack.c.bf16 %v1761_v33, %v1761_v33 }
 0x11a   : > { %v740_v35 = vpack.c.bf16 %v701_v34, %v701_v34  ;;  %v1762_v36 = vpop.f32.mrb[2].mxu1  ;;  %v2103_v53 = vpop.f32.mrb[0].mxu0 }
 0x11b   : > { %v704_v37 = vpop.f32.mrb[3].mxu1  ;;  %v743_v42 = vpack.c.bf16 %v1762_v36, %v1762_v36  ;;  %v846_v46 = vsel %vm752_vm1, %v742_v38, 0  ;;  %v572_v55 = vpop.f32.mrb[1].mxu0 }
 0x11c   : > { %v754_v39 = vsel %vm752_vm1, %v740_v35, 0  ;;  %v741_v40 = vpack.c.bf16 %v704_v37, %v704_v37  ;;  %v2109_v57 = vpop.f32.mrb[2].mxu0  ;;  %v2174_v38 = vpop.permute.xlu1 %1239 }
 0x11d   : > { %1768 = vmatpush3.bf16.msra.mxu0 %v754_v39  ;;  %v892_v49 = vsel %vm752_vm1, %v743_v42, 0  ;;  %v575_v59 = vpop.f32.mrb[3].mxu0 }
 0x11e   : > { %v800_v43 = vsel %vm752_vm1, %v741_v40, 0  ;;  %1779 = vmatprep.subr.bf16.mxu0 %v1903_v44 }
 0x11f   : > { %1774 = vmatpush3.bf16.msra.mxu1 %v800_v43 }
 0x120   : > { %1770 = vmatmul.mubr.msk.bf16.vlgmr.msra.gmra.mrb[8].mxu0 %vm748_vm2, %v732_v41  ;;  %1785 = vmatprep.subr.bf16.mxu1 %v1903_v44  ;;  %v1765_v47 = vpop.f32.mrb[4].mxu1 }
 0x121   : > { %1780 = vmatpush3.bf16.msra.mxu0 %v846_v46  ;;  %1781 = vmatprep.mubr.msk.bf16.mxu0 %vm1904_vm0, %v1903_v44  ;;  %v717_v48 = vpop.f32.mrb[5].mxu1  ;;  %v746_v63 = vpack.c.bf16 %v1765_v47, %v1765_v47 }
 0x122   : > { %1776 = vmatmul.mubr.msk.bf16.vlgmr.msra.gmra.mrb[8].mxu1 %vm748_vm2, %v733_v45  ;;  %v744_v50 = vpack.c.bf16 %v717_v48, %v717_v48  ;;  %v1766_v51 = vpop.f32.mrb[6].mxu1  ;;  %1791 = vmatprep.subr.bf16.mxu0 %v1903_v44  ;;  %v2123_v62 = vpop.f32.mrb[4].mxu0 }
 0x123   : > { %1786 = vmatpush3.bf16.msra.mxu1 %v892_v49  ;;  %1787 = vmatprep.mubr.msk.bf16.mxu1 %vm1904_vm0, %v1903_v44  ;;  %v720_v52 = vpop.f32.mrb[7].mxu1  ;;  %v2126_v0 = vpop.f32.mrb[5].mxu0  ;;  %v747_v3 = vpack.c.bf16 %v1766_v51, %v1766_v51  ;;  %v1030_v6 = vsel %vm752_vm1, %v746_v63, 0 }
 0x124   : > { %v745_v54 = vpack.c.bf16 %v720_v52, %v720_v52  ;;  %1797 = vmatprep.subr.bf16.mxu1 %v1903_v44  ;;  %v938_v58 = vsel %vm752_vm1, %v744_v50, 0  ;;  %v2131_v2 = vpop.f32.mrb[6].mxu0 }
 0x125   : > { %v2133_v4 = vpop.f32.mrb[7].mxu0  ;;  %v1076_v7 = vsel %vm752_vm1, %v747_v3, 0 }
 0x126   : > { %v984_v61 = vsel %vm752_vm1, %v745_v54, 0 }
 0x128   : > { %1782 = vmatmul.mubr.msk.bf16.vlgmr.msra.gmra.mrb[12].mxu0 %vm748_vm2, %v734_v56 }
 0x129   : > { %1792 = vmatpush3.bf16.msra.mxu0 %v938_v58  ;;  %1793 = vmatprep.mubr.msk.bf16.mxu0 %vm1904_vm0, %v1903_v44 }
 0x12a   : > { %1788 = vmatmul.mubr.msk.bf16.vlgmr.msra.gmra.mrb[12].mxu1 %vm748_vm2, %v735_v60  ;;  %1803 = vmatprep.subr.bf16.mxu0 %v1903_v44 }
 0x12b   : > { %1798 = vmatpush3.bf16.msra.mxu1 %v984_v61  ;;  %1799 = vmatprep.mubr.msk.bf16.mxu1 %vm1904_vm0, %v1903_v44 }
 0x12c   : > { %1809 = vmatprep.subr.bf16.mxu1 %v1903_v44 }
 0x130   : > { %1794 = vmatmul.mubr.msk.bf16.vlgmr.msra.gmra.mrb[16].mxu0 %vm748_vm2, %v736_v1 }
 0x131   : > { %1804 = vmatpush3.bf16.msra.mxu0 %v1030_v6  ;;  %1805 = vmatprep.mubr.msk.bf16.mxu0 %vm1904_vm0, %v1903_v44 }
 0x132   : > { %1800 = vmatmul.mubr.msk.bf16.vlgmr.msra.gmra.mrb[16].mxu1 %vm748_vm2, %v737_v5 }
 0x133   : > { %1810 = vmatpush3.bf16.msra.mxu1 %v1076_v7  ;;  %1811 = vmatprep.mubr.msk.bf16.mxu1 %vm1904_vm0, %v1903_v44  ;;  %v1216_v44 = vpop.permute.xlu0 %1215 }
 0x137   : > { %v1228_v17 = vpop.permute.xlu0 %1227 }
 0x138   : > { %1806 = vmatmul.mubr.msk.bf16.vlgmr.msra.gmra.mrb[20].mxu0 %vm748_vm2, %v738_v8 }
 0x13a   : > { %1812 = vmatmul.mubr.msk.bf16.vlgmr.msra.gmra.mrb[20].mxu1 %vm748_vm2, %v739_v9 }
 0x13b   : > { %v1236_v35 = vpop.permute.xlu0 %1235 }
 0x13f   : > { %v2184_v52 = vpop.permute.xlu0 %1346 }
 0x1f3   : > { %v790_v18 = vpop.f32.mrb[8].mxu0 }
 0x1f4   : > { %v1120_v19 = vadd.f32 %v790_v18, %v572_v55  ;;  %v1771_v22 = vpop.f32.mrb[9].mxu0  ;;  %v2189_v55 = vpop.permute.xlu1 %1350 }
 0x1f5   : > { %v836_v23 = vpop.f32.mrb[8].mxu1  ;;  %v793_v24 = vpop.f32.mrb[10].mxu0 }
 0x1f6   : > { %v2164_v25 = vadd.f32 %v1212_v10, %v1120_v19  ;;  %v1121_v26 = vadd.f32 %v836_v23, %v575_v59  ;;  %v1772_v27 = vpop.f32.mrb[11].mxu0  ;;  %v1777_v28 = vpop.f32.mrb[9].mxu1 }
 0x1f7   : > { %v839_v29 = vpop.f32.mrb[10].mxu1 }
 0x1f8   : > { %v1377_v30 = vsub.f32 %v2162_v20, %v2164_v25  ;;  %v2168_v31 = vadd.f32 %v1216_v44, %v1121_v26  ;;  %v1778_v32 = vpop.f32.mrb[11].mxu1  ;;  %v2200_v44 = vpop.permute.xlu0 %1354 }
 0x1f9   : > { %v2207_v18 = vpop.permute.xlu1 %1358 }
 0x1fa   : > { %v1385_v33 = vadd.f32 %v1377_v30, %v2154_v12  ;;  %v1378_v34 = vsub.f32 %v2162_v20, %v2168_v31  ;;  %v1370_v27 = vsub.f32 %v2156_v13, %v2168_v31 }
 0x1fb   : > { %v882_v36 = vpop.f32.mrb[12].mxu0 }
 0x1fc   : > { %1863 = vrcp.f32 %v1385_v33  ;;  %v1386_v37 = vadd.f32 %v1378_v34, %v2156_v13  ;;  %v1122_v39 = vadd.f32 %v2103_v53, %v882_v36  ;;  %v1783_v40 = vpop.f32.mrb[13].mxu0  ;;  %v1441_v34 = vld [vmem:[%s2217_s10] sm:$0xff] }
 0x1fd   : > { %v928_v41 = vpop.f32.mrb[12].mxu1  ;;  %v885_v42 = vpop.f32.mrb[14].mxu0 }
 0x1fe   : > { %1865 = vrcp.f32 %v1386_v37  ;;  %v2177_v43 = vadd.f32 %v1220_v11, %v1122_v39  ;;  %v1123_v45 = vadd.f32 %v2109_v57, %v928_v41  ;;  %v1784_v46 = vpop.f32.mrb[15].mxu0  ;;  %v1789_v47 = vpop.f32.mrb[13].mxu1  ;;  %v1442_v42 = vld [vmem:[%s2217_s10 + $0x8] sm:$0xff] }
 0x1ff   : > { %v931_v48 = vpop.f32.mrb[14].mxu1 }
 0x200   : > { %v1379_v49 = vsub.f32 %v2162_v20, %v2177_v43  ;;  %v2182_v50 = vadd.f32 %v1224_v14, %v1123_v45  ;;  %v1790_v51 = vpop.f32.mrb[15].mxu1  ;;  %v1363_v45 = vpop.permute.xlu0 %1362 }
 0x202   : > { %v1387_v53 = vadd.f32 %v1379_v49, %v2184_v52  ;;  %v1380_v54 = vsub.f32 %v2162_v20, %v2182_v50 }
 0x203   : > { %v974_v56 = vpop.f32.mrb[16].mxu0 }
 0x204   : > { %1867 = vrcp.f32 %v1387_v53  ;;  %v1388_v57 = vadd.f32 %v1380_v54, %v2189_v55  ;;  %v1124_v58 = vadd.f32 %v974_v56, %v2126_v0  ;;  %v1795_v59 = vpop.f32.mrb[17].mxu0  ;;  %v1367_v56 = vpop.permute.xlu1 %1366 }
 0x205   : > { %v1020_v60 = vpop.f32.mrb[16].mxu1  ;;  %v977_v61 = vpop.f32.mrb[18].mxu0 }
 0x206   : > { %v1864_v63 = vpop.eup %1863  ;;  %1869 = vrcp.f32 %v1388_v57  ;;  %v2193_v1 = vadd.f32 %v1228_v17, %v1124_v58  ;;  %v1125_v3 = vadd.f32 %v1020_v60, %v2133_v4  ;;  %v1796_v5 = vpop.f32.mrb[19].mxu0  ;;  %v1369_v17 = vsub.f32 %v2154_v12, %v2164_v25 }
 0x207   : > { %v1801_v6 = vpop.f32.mrb[17].mxu1  ;;  %v1401_v8 = vmul.f32 %v1864_v63, %v1385_v33  ;;  %v1372_v61 = vsub.f32 %v2189_v55, %v2182_v50 }
 0x208   : > { %v1023_v7 = vpop.f32.mrb[18].mxu1  ;;  %v1866_v9 = vpop.eup %1865  ;;  %v1381_v10 = vsub.f32 %v2162_v20, %v2193_v1  ;;  %v2198_v11 = vadd.f32 %v1232_v21, %v1125_v3  ;;  %v1373_v50 = vsub.f32 %v2200_v44, %v2193_v1 }
 0x209   : > { %v1802_v0 = vpop.f32.mrb[19].mxu1  ;;  %v1409_v14 = vsub.f32 2.0, %v1401_v8  ;;  %v1402_v15 = vmul.f32 %v1866_v9, %v1386_v37 }
 0x20a   : > { %v1389_v16 = vadd.f32 %v1381_v10, %v2200_v44  ;;  %v1382_v4 = vsub.f32 %v2162_v20, %v2198_v11  ;;  %v1444_v0 = vld [vmem:[%s2217_s10 + $0x18] sm:$0xff] }
 0x20b   : > { %v1066_v19 = vpop.f32.mrb[20].mxu0  ;;  %v1417_v22 = vmul.f32 %v1864_v63, %v1409_v14  ;;  %v1410_v21 = vsub.f32 2.0, %v1402_v15  ;;  %v1374_v15 = vsub.f32 %v2207_v18, %v2198_v11 }
 0x20c   : > { %1871 = vrcp.f32 %v1389_v16  ;;  %v1390_v23 = vadd.f32 %v1382_v4, %v2207_v18  ;;  %v1126_v24 = vadd.f32 %v2123_v62, %v1066_v19  ;;  %v1807_v26 = vpop.f32.mrb[21].mxu0 }
 0x20d   : > { %v1112_v28 = vpop.f32.mrb[20].mxu1  ;;  %v1425_v29 = vmul.f32 %v1417_v22, %v1369_v17  ;;  %v1418_v30 = vmul.f32 %v1866_v9, %v1410_v21  ;;  %v1069_v32 = vpop.f32.mrb[22].mxu0  ;;  %v1445_v22 = vld [vmem:[%s2217_s10 + $0x20] sm:$0xff] }
 0x20e   : > { %v1868_v12 = vpop.eup %1867  ;;  %1873 = vrcp.f32 %v1390_v23  ;;  %v2213_v25 = vadd.f32 %v1236_v35, %v1126_v24  ;;  %v1127_v33 = vadd.f32 %v2131_v2, %v1112_v28  ;;  %v1813_v62 = vpop.f32.mrb[21].mxu1 }
 0x20f   : > { %v1808_v36 = vpop.f32.mrb[23].mxu0  ;;  %v1433_v37 = vsub.f32 1.0, %v1425_v29  ;;  %v1426_v39 = vmul.f32 %v1418_v30, %v1370_v27  ;;  %v1115_v13 = vpop.f32.mrb[22].mxu1  ;;  %v1403_v31 = vmul.f32 %v1868_v12, %v1387_v53  ;;  %v1371_v53 = vsub.f32 %v2184_v52, %v2177_v43  ;;  %v1446_v27 = vld [vmem:[%s2217_s10 + $0x28] sm:$0xff]  ;;  %v1447_v62 = vld [vmem:[%s2217_s10 + $0x30] sm:$0xff] }
 0x210   : > { %v1870_v40 = vpop.eup %1869  ;;  %v1383_v41 = vsub.f32 %v2162_v20, %v2213_v25  ;;  %v2223_v35 = vadd.f32 %v2174_v38, %v1127_v33  ;;  %v1814_v2 = vpop.f32.mrb[23].mxu1  ;;  %v1375_v30 = vsub.f32 %v1363_v45, %v2213_v25 }
 0x211   : > { %v1449_v46 = vmul.f32 %v1441_v34, %v1433_v37  ;;  %v1434_v47 = vsub.f32 1.0, %v1426_v39  ;;  %v1411_v48 = vsub.f32 2.0, %v1403_v31  ;;  %v1404_v49 = vmul.f32 %v1870_v40, %v1388_v57  ;;  %v1448_v39 = vld [vmem:[%s2217_s10 + $0x38] sm:$0xff] }
 0x212   : > { %v1391_v51 = vadd.f32 %v1383_v41, %v1363_v45  ;;  %v1384_v54 = vsub.f32 %v2162_v20, %v2223_v35  ;;  %v1443_v20 = vld [vmem:[%s2217_s10 + $0x10] sm:$0xff] }
 0x213   : > { %1457 = vadd.xlane.f32.xlu0 %v1449_v46  ;;  %v1450_v58 = vmul.f32 %v1442_v42, %v1434_v47  ;;  %v1419_v38 = vmul.f32 %v1868_v12, %v1411_v48  ;;  %v1412_v59 = vsub.f32 2.0, %v1404_v49  ;;  %v1376_v12 = vsub.f32 %v1367_v56, %v2223_v35 }
 0x214   : > { %1875 = vrcp.f32 %v1391_v51  ;;  %v1392_v60 = vadd.f32 %v1384_v54, %v1367_v56 }
 0x215   : > { %1459 = vadd.xlane.f32.xlu1 %v1450_v58  ;;  %v1427_v57 = vmul.f32 %v1419_v38, %v1371_v53  ;;  %v1420_v63 = vmul.f32 %v1870_v40, %v1412_v59 }
 0x216   : > { %v1872_v3 = vpop.eup %1871  ;;  %1877 = vrcp.f32 %v1392_v60 }
 0x217   : > { %v1435_v5 = vsub.f32 1.0, %v1427_v57  ;;  %v1428_v6 = vmul.f32 %v1420_v63, %v1372_v61  ;;  %v1405_v43 = vmul.f32 %v1872_v3, %v1389_v16 }
 0x218   : > { %v1874_v52 = vpop.eup %1873 }
 0x219   : > { %v1451_v7 = vmul.f32 %v1443_v20, %v1435_v5  ;;  %v1436_v8 = vsub.f32 1.0, %v1428_v6  ;;  %v1413_v9 = vsub.f32 2.0, %v1405_v43  ;;  %v1406_v10 = vmul.f32 %v1874_v52, %v1390_v23 }
 0x21b   : > { %1461 = vadd.xlane.f32.xlu0 %v1451_v7  ;;  %v1421_v55 = vmul.f32 %v1872_v3, %v1413_v9  ;;  %v1414_v14 = vsub.f32 2.0, %v1406_v10  ;;  %v1452_v4 = vmul.f32 %v1444_v0, %v1436_v8 }
 0x21d   : > { %v1429_v17 = vmul.f32 %v1421_v55, %v1373_v50  ;;  %v1422_v16 = vmul.f32 %v1874_v52, %v1414_v14 }
 0x21e   : > { %v1876_v19 = vpop.eup %1875 }
 0x21f   : > { %1463 = vadd.xlane.f32.xlu0 %v1452_v4  ;;  %v1437_v21 = vsub.f32 1.0, %v1429_v17  ;;  %v1430_v24 = vmul.f32 %v1422_v16, %v1374_v15  ;;  %v1407_v23 = vmul.f32 %v1876_v19, %v1391_v51 }
 0x220   : > { %v1878_v26 = vpop.eup %1877 }
 0x221   : > { %v1453_v28 = vmul.f32 %v1445_v22, %v1437_v21  ;;  %v1438_v1 = vsub.f32 1.0, %v1430_v24  ;;  %v1415_v44 = vsub.f32 2.0, %v1407_v23  ;;  %v1408_v29 = vmul.f32 %v1878_v26, %v1392_v60 }
 0x223   : > { %1465 = vadd.xlane.f32.xlu1 %v1453_v28  ;;  %v1454_v11 = vmul.f32 %v1446_v27, %v1438_v1  ;;  %v1423_v18 = vmul.f32 %v1876_v19, %v1415_v44  ;;  %v1416_v32 = vsub.f32 2.0, %v1408_v29 }
 0x225   : > { %1467 = vadd.xlane.f32.xlu0 %v1454_v11  ;;  %v1431_v33 = vmul.f32 %v1423_v18, %v1375_v30  ;;  %v1424_v34 = vmul.f32 %v1878_v26, %v1416_v32 }
 0x227   : > { %v1439_v36 = vsub.f32 1.0, %v1431_v33  ;;  %v1432_v37 = vmul.f32 %v1424_v34, %v1376_v12 }
 0x229   : > { %v1455_v13 = vmul.f32 %v1447_v62, %v1439_v36  ;;  %v1440_v31 = vsub.f32 1.0, %v1432_v37 }
 0x22b   : > { %1469 = vadd.xlane.f32.xlu1 %v1455_v13  ;;  %v1456_v40 = vmul.f32 %v1448_v39, %v1440_v31 }
 0x22d   : > { %1471 = vadd.xlane.f32.xlu0 %v1456_v40 }
 0x2a0   : > { %v1458_v25 = vpop.xlane.xlu0 %1457 }
 0x2a1   : > { %1474 = vst.msk [vmem:[%s2245_s11] sm:$0xff] %vm1473_vm3, %v1458_v25 }
 0x2a2   : > { %v1460_v41 = vpop.xlane.xlu1 %1459 }
 0x2a3   : > { %1475 = vst.msk [vmem:[%s2245_s11 + $0x8] sm:$0xff] %vm1473_vm3, %v1460_v41 }
 0x2a8   : > { %v1462_v35 = vpop.xlane.xlu0 %1461  ;;  %v1532_v48 = vld [vmem:[%s2245_s11] sm:$0xff] (%p1987_p5) }
 0x2a9   : > { %1476 = vst.msk [vmem:[%s2245_s11 + $0x10] sm:$0xff] %vm1473_vm3, %v1462_v35  ;;  %1533 = vst [vmem:[%s1490_s16] sm:$0xff] (%p1987_p5), %v1532_v48 }
 0x2aa   : > { %v1534_v49 = vld [vmem:[%s2245_s11 + $0x8] sm:$0xff] (%p1987_p5) }
 0x2ab   : > { %1535 = vst [vmem:[%s1490_s16 + $0x10] sm:$0xff] (%p1987_p5), %v1534_v49 }
 0x2ac   : > { %v1464_v42 = vpop.xlane.xlu0 %1463 }
 0x2ad   : > { %1477 = vst.msk [vmem:[%s2245_s11 + $0x18] sm:$0xff] %vm1473_vm3, %v1464_v42 }
 0x2b0   : > { %v1466_v2 = vpop.xlane.xlu1 %1465  ;;  %v1536_v51 = vld [vmem:[%s2245_s11 + $0x10] sm:$0xff] (%p1987_p5) }
 0x2b1   : > { %1478 = vst.msk [vmem:[%s2245_s11 + $0x20] sm:$0xff] %vm1473_vm3, %v1466_v2  ;;  %1537 = vst [vmem:[%s1490_s16 + $0x20] sm:$0xff] (%p1987_p5), %v1536_v51 }
 0x2b2   : > { %v1468_v45 = vpop.xlane.xlu0 %1467 }
 0x2b3   : > { %1479 = vst.msk [vmem:[%s2245_s11 + $0x28] sm:$0xff] %vm1473_vm3, %v1468_v45 }
 0x2b4   : > { %v1538_v54 = vld [vmem:[%s2245_s11 + $0x18] sm:$0xff] (%p1987_p5) }
 0x2b5   : > { %1488 = sbr.rel (!%p1987_p5) target bundleno = 708 (0x2c4), region = 132  ;;  %1539 = vst [vmem:[%s1490_s16 + $0x30] sm:$0xff] (%p1987_p5), %v1538_v54 }
 0x2b8   : > { %v1470_v46 = vpop.xlane.xlu1 %1469  ;;  %v1540_v53 = vld [vmem:[%s2245_s11 + $0x20] sm:$0xff] (%p1987_p5) }
 0x2b9   : > { %1480 = vst.msk [vmem:[%s2245_s11 + $0x30] sm:$0xff] %vm1473_vm3, %v1470_v46  ;;  %1541 = vst [vmem:[%s1490_s16 + $0x40] sm:$0xff] (%p1987_p5), %v1540_v53 }
 0x2ba   : > { %v1472_v47 = vpop.xlane.xlu0 %1471  ;;  %v1542_v56 = vld [vmem:[%s2245_s11 + $0x28] sm:$0xff] (%p1987_p5) }
 0x2bb   : > { %1481 = vst.msk [vmem:[%s2245_s11 + $0x38] sm:$0xff] %vm1473_vm3, %v1472_v47  ;;  %1543 = vst [vmem:[%s1490_s16 + $0x50] sm:$0xff] (%p1987_p5), %v1542_v56 }
 0x2c0   : > { %v1544_v58 = vld [vmem:[%s2245_s11 + $0x30] sm:$0xff] }
 0x2c1   : > { %1545 = vst [vmem:[%s1490_s16 + $0x60] sm:$0xff] %v1544_v58 }
 0x2c2   : > { %v1546_v38 = vld [vmem:[%s2245_s11 + $0x38] sm:$0xff] }
 0x2c3   : > { %1547 = vst [vmem:[%s1490_s16 + $0x70] sm:$0xff] %v1546_v38 }
 0x2c4 PF: > { %p15_p11 = scmp.ge.s32.totalorder %s1971_s9, 4   ;;  %s2298_s27 = smov %s1897_s28 }
 0x2c5   : > { %s2299_s28 = smov %s1981_s12  ;;  %s2300_s29 = smov %s1971_s9 }
 0x2c6   :  { %17 = sbr.rel (!%p15_p11) target bundleno = 2 (0x2), region = 212 }

</bundles_post_ra>
